<compile_context>
chip_gen: v7x
topology: tpu7x:2x2x1
jax: 0.10.0
libtpu: 0.0.40
codegen_flags: <defaults>
</compile_context>

<pallas_src>
import functools

import jax
import jax.numpy as jnp
from jax.experimental import pallas as pl
from jax.experimental.pallas import tpu as pltpu


# Tap order t = ky*3 + kx, matching the (C_out, 9*C_in) weight matrix layout.
_OFFSETS = tuple((ky - 1, kx - 1) for ky in range(3) for kx in range(3))


def resblock_kernel(x_ref, m_ref, w1_ref, b1_ref, w2_ref, b2_ref, o_ref, *, W):
    # x_ref:  (C_pad, L)   L = Nb*P_pad; pixels row-major in the lane dim
    # m_ref:  (9, L)       0/1 validity of tap t at each output pixel (SAME pad)
    # w*_ref: (C_pad, 9*C_pad)  Wmat[co, t*C_pad + ci] = W_oihw[co, ci, ky, kx]
    # b*_ref: (C_pad, 1)   float32
    # o_ref:  (C_pad, L)
    L = x_ref.shape[-1]
    x = x_ref[...]                       # model dtype (bf16 stays bf16 for MXU)
    m = m_ref[...]                       # (9, L), same dtype as x

    def conv3x3(z, w_ref, b_ref):
        # im2col via XLU rotations: tap (oy, ox) at pixel p reads pixel
        # p + oy*W + ox; out-of-image reads are zeroed by the precomputed mask
        # (== SAME zero padding).  Center tap needs neither roll nor mask.
        taps = []
        for t, (oy, ox) in enumerate(_OFFSETS):
            s = oy * W + ox
            if s == 0:
                tap = z
            else:
                tap = pltpu.roll(z, shift=(-s) % L, axis=1)   # y[:,p] == z[:,p+s]
                tap = tap * m[t:t + 1, :]
            taps.append(tap)
        patches = jnp.concatenate(taps, axis=0)               # (9*C_pad, L)
        y = jnp.dot(w_ref[...], patches,
                    preferred_element_type=jnp.float32)       # single MXU matmul
        return y + b_ref[...]                                  # (C_pad,1) broadcast

    h = jnp.maximum(conv3x3(x, w1_ref, b1_ref), 0.0).astype(x.dtype)  # conv1+ReLU
    y = conv3x3(h, w2_ref, b2_ref)                                     # conv2 (f32)
    o_ref[...] = (x.astype(jnp.float32) + y).astype(o_ref.dtype)       # residual


def _round_up(x, m):
    return (x + m - 1) // m * m


def _tap_masks(H, W, P_pad, Nb, dtype):
    # (9, Nb*P_pad) 0/1 masks: tap t valid at pixel p iff the shifted pixel is
    # inside the image (and p itself is a real pixel, not lane padding).
    P = H * W
    p = jnp.arange(P_pad, dtype=jnp.int32)
    row, col = p // W, p % W
    in_img = p < P
    rows = []
    for (oy, ox) in _OFFSETS:
        rows.append(in_img & (row + oy >= 0) & (row + oy < H)
                    & (col + ox >= 0) & (col + ox < W))
    m = jnp.stack(rows).astype(dtype)              # (9, P_pad)
    return jnp.tile(m, (1, Nb))                    # (9, Nb*P_pad)


def resblock_pallas_nchw(x_nchw, w1, b1, w2, b2, *, act_vmem_budget=24 << 20):
    # PyTorch-facing entry: NCHW input, OIHW conv weights, NCHW output.
    N, C, H, W = x_nchw.shape
    P = H * W
    dt = x_nchw.dtype
    itemsize = jnp.dtype(dt).itemsize
    sublane = (8 * 4) // itemsize                  # 8 for f32, 16 for bf16
    C_pad = _round_up(C, sublane)
    P_pad = _round_up(P, 128)

    # Lane-dense slab: (C_pad, N*P_pad), pixels row-major in the lane dim.
    x = jnp.pad(x_nchw.reshape(N, C, P),
                ((0, 0), (0, C_pad - C), (0, P_pad - P)))
    x2 = jnp.transpose(x, (1, 0, 2)).reshape(C_pad, N * P_pad)

    # OIHW -> (C_out_pad, 9*C_in_pad) matmul form (zero-padded channels).
    def to_mat(w):
        wp = jnp.pad(w, ((0, C_pad - C), (0, C_pad - C), (0, 0), (0, 0)))
        return jnp.transpose(wp, (0, 2, 3, 1)).reshape(C_pad, 9 * C_pad).astype(dt)

    w1m, w2m = to_mat(w1), to_mat(w2)
    b1c = jnp.pad(b1, (0, C_pad - C)).astype(jnp.float32).reshape(C_pad, 1)
    b2c = jnp.pad(b2, (0, C_pad - C)).astype(jnp.float32).reshape(C_pad, 1)

    # Batch elements per grid step: largest divisor of N whose per-step VMEM
    # footprint fits the activation budget (sized to stay inside v7x's 64 MiB;
    # on v5e/v6e the same choice simply yields bigger, fewer steps).
    def footprint(nb):
        L = nb * P_pad
        return (2 * 2 * C_pad * L * itemsize      # double-buffered x + out blocks
                + 2 * 9 * C_pad * L * itemsize    # live im2col patches (both convs)
                + C_pad * L * 4                   # f32 conv accumulator / h
                + 9 * L * itemsize)               # tap masks
    Nb = 1
    for d in range(1, N + 1):
        if N % d == 0 and footprint(d) <= act_vmem_budget:
            Nb = d
    L_blk = Nb * P_pad

    masks = _tap_masks(H, W, P_pad, Nb, dt)
    kernel = functools.partial(resblock_kernel, W=W)

    grid_spec = pltpu.PrefetchScalarGridSpec(
        num_scalar_prefetch=0,
        grid=(N // Nb,),
        in_specs=[
            pl.BlockSpec((C_pad, L_blk), lambda i: (0, i)),
            # Grid-invariant operands (constant index_map -> fetched once).
            pl.BlockSpec((9, L_blk), lambda i: (0, 0)),
            pl.BlockSpec((C_pad, 9 * C_pad), lambda i: (0, 0)),
            pl.BlockSpec((C_pad, 1), lambda i: (0, 0)),
            pl.BlockSpec((C_pad, 9 * C_pad), lambda i: (0, 0)),
            pl.BlockSpec((C_pad, 1), lambda i: (0, 0)),
        ],
        out_specs=pl.BlockSpec((C_pad, L_blk), lambda i: (0, i)),
    )

    vmem_limit = int(min(64 << 20, max(16 << 20, 2 * footprint(Nb))))

    y2 = pl.pallas_call(
        kernel,
        out_shape=jax.ShapeDtypeStruct((C_pad, N * P_pad), dt),
        grid_spec=grid_spec,
        compiler_params=pltpu.CompilerParams(
            # On v7x the batch-block axis could also be CORE_PARALLEL across the
            # two TensorCores; "parallel" is the portable choice here.
            dimension_semantics=("parallel",),
            vmem_limit_bytes=vmem_limit),
    )(x2, masks, w1m, b1c, w2m, b2c)

    y = y2.reshape(C_pad, N, P_pad).transpose(1, 0, 2)[:, :C, :P]
    return y.reshape(N, C, H, W)


def resblock_reference_nchw(x, w1, b1, w2, b2):
    # Pure-JAX reference matching PyTorch Conv2d (NCHW / OIHW, padding=1).
    def conv(z, w, b):
        y = jax.lax.conv_general_dilated(
            z, w, window_strides=(1, 1), padding='SAME',
            dimension_numbers=('NCHW', 'OIHW', 'NCHW'))
        return y + b.reshape(1, -1, 1, 1)

    h = jnp.maximum(conv(x, w1, b1), 0.0)
    return x + conv(h, w2, b2)


if __name__ == "__main__":
    N, C, H, W = 2, 4, 16, 16

    key = jax.random.PRNGKey(0)
    kx, k1, k2, k3, k4 = jax.random.split(key, 5)

    # Deterministic synthetic parameters, PyTorch Conv2d layout (O, I, kH, kW).
    scale = 1.0 / (C * 9) ** 0.5
    x = jax.random.normal(kx, (N, C, H, W), jnp.float32)
    w1 = jax.random.normal(k1, (C, C, 3, 3), jnp.float32) * scale
    b1 = jax.random.normal(k2, (C,), jnp.float32) * 0.1
    w2 = jax.random.normal(k3, (C, C, 3, 3), jnp.float32) * scale
    b2 = jax.random.normal(k4, (C,), jnp.float32) * 0.1

    y = jax.block_until_ready(resblock_pallas_nchw(x, w1, b1, w2, b2))
    y_ref = jax.block_until_ready(resblock_reference_nchw(x, w1, b1, w2, b2))

    assert y.shape == (N, C, H, W)
    err = float(jnp.max(jnp.abs(y - y_ref)))
    assert jnp.allclose(y, y_ref, atol=1e-4, rtol=1e-4), f"max abs err {err}"

    print("KERNEL_OK")
</pallas_src>

<mosaic_0001>
module attributes {stable_mosaic.version = 11 : i64} {
  func.func @resblock_kernel(%arg0: i32, %arg1: memref<8x512xf32, #tpu.memory_space<vmem>>, %arg2: memref<9x512xf32, #tpu.memory_space<vmem>>, %arg3: memref<8x72xf32, #tpu.memory_space<vmem>>, %arg4: memref<8x1xf32, #tpu.memory_space<vmem>>, %arg5: memref<8x72xf32, #tpu.memory_space<vmem>>, %arg6: memref<8x1xf32, #tpu.memory_space<vmem>>, %arg7: memref<8x512xf32, #tpu.memory_space<vmem>>) attributes {dimension_semantics = [#tpu.dimension_semantics<parallel>], iteration_bounds = array<i64: 1>, scalar_prefetch = 0 : i64, scratch_operands = 0 : i64, tpu.core_type = #tpu.core_type<tc>, window_params = [{transform_indices = @transform_0, window_bounds = array<i64: 8, 512>}, {pipeline_mode = #tpu.pipeline_mode<synchronous>, transform_indices = @transform_1, window_bounds = array<i64: 9, 512>}, {pipeline_mode = #tpu.pipeline_mode<synchronous>, transform_indices = @transform_2, window_bounds = array<i64: 8, 72>}, {pipeline_mode = #tpu.pipeline_mode<synchronous>, transform_indices = @transform_3, window_bounds = array<i64: 8, 1>}, {pipeline_mode = #tpu.pipeline_mode<synchronous>, transform_indices = @transform_4, window_bounds = array<i64: 8, 72>}, {pipeline_mode = #tpu.pipeline_mode<synchronous>, transform_indices = @transform_5, window_bounds = array<i64: 8, 1>}, {transform_indices = @transform_6, window_bounds = array<i64: 8, 512>}]} {
    %c0 = arith.constant 0 : index
    %c0_0 = arith.constant 0 : index
    %0 = vector.load %arg1[%c0, %c0_0] : memref<8x512xf32, #tpu.memory_space<vmem>>, vector<8x512xf32>
    %c0_1 = arith.constant 0 : index
    %c0_2 = arith.constant 0 : index
    %1 = vector.load %arg2[%c0_1, %c0_2] : memref<9x512xf32, #tpu.memory_space<vmem>>, vector<9x512xf32>
    %c17_i32 = arith.constant 17 : i32
    %2 = tpu.dynamic_rotate %0 by %c17_i32 dim 1 : vector<8x512xf32>, i32 -> vector<8x512xf32>
    %3 = vector.extract_strided_slice %1 {offsets = [0, 0], sizes = [1, 512], strides = [1, 1]} : vector<9x512xf32> to vector<1x512xf32>
    %4 = vector.broadcast %3 : vector<1x512xf32> to vector<8x512xf32>
    %5 = arith.mulf %2, %4 : vector<8x512xf32>
    %c16_i32 = arith.constant 16 : i32
    %6 = tpu.dynamic_rotate %0 by %c16_i32 dim 1 : vector<8x512xf32>, i32 -> vector<8x512xf32>
    %7 = vector.extract_strided_slice %1 {offsets = [1, 0], sizes = [1, 512], strides = [1, 1]} : vector<9x512xf32> to vector<1x512xf32>
    %8 = vector.broadcast %7 : vector<1x512xf32> to vector<8x512xf32>
    %9 = arith.mulf %6, %8 : vector<8x512xf32>
    %c15_i32 = arith.constant 15 : i32
    %10 = tpu.dynamic_rotate %0 by %c15_i32 dim 1 : vector<8x512xf32>, i32 -> vector<8x512xf32>
    %11 = vector.extract_strided_slice %1 {offsets = [2, 0], sizes = [1, 512], strides = [1, 1]} : vector<9x512xf32> to vector<1x512xf32>
    %12 = vector.broadcast %11 : vector<1x512xf32> to vector<8x512xf32>
    %13 = arith.mulf %10, %12 : vector<8x512xf32>
    %c1_i32 = arith.constant 1 : i32
    %14 = tpu.dynamic_rotate %0 by %c1_i32 dim 1 : vector<8x512xf32>, i32 -> vector<8x512xf32>
    %15 = vector.extract_strided_slice %1 {offsets = [3, 0], sizes = [1, 512], strides = [1, 1]} : vector<9x512xf32> to vector<1x512xf32>
    %16 = vector.broadcast %15 : vector<1x512xf32> to vector<8x512xf32>
    %17 = arith.mulf %14, %16 : vector<8x512xf32>
    %c511_i32 = arith.constant 511 : i32
    %18 = tpu.dynamic_rotate %0 by %c511_i32 dim 1 : vector<8x512xf32>, i32 -> vector<8x512xf32>
    %19 = vector.extract_strided_slice %1 {offsets = [5, 0], sizes = [1, 512], strides = [1, 1]} : vector<9x512xf32> to vector<1x512xf32>
    %20 = vector.broadcast %19 : vector<1x512xf32> to vector<8x512xf32>
    %21 = arith.mulf %18, %20 : vector<8x512xf32>
    %c497_i32 = arith.constant 497 : i32
    %22 = tpu.dynamic_rotate %0 by %c497_i32 dim 1 : vector<8x512xf32>, i32 -> vector<8x512xf32>
    %23 = vector.extract_strided_slice %1 {offsets = [6, 0], sizes = [1, 512], strides = [1, 1]} : vector<9x512xf32> to vector<1x512xf32>
    %24 = vector.broadcast %23 : vector<1x512xf32> to vector<8x512xf32>
    %25 = arith.mulf %22, %24 : vector<8x512xf32>
    %c496_i32 = arith.constant 496 : i32
    %26 = tpu.dynamic_rotate %0 by %c496_i32 dim 1 : vector<8x512xf32>, i32 -> vector<8x512xf32>
    %27 = vector.extract_strided_slice %1 {offsets = [7, 0], sizes = [1, 512], strides = [1, 1]} : vector<9x512xf32> to vector<1x512xf32>
    %28 = vector.broadcast %27 : vector<1x512xf32> to vector<8x512xf32>
    %29 = arith.mulf %26, %28 : vector<8x512xf32>
    %c495_i32 = arith.constant 495 : i32
    %30 = tpu.dynamic_rotate %0 by %c495_i32 dim 1 : vector<8x512xf32>, i32 -> vector<8x512xf32>
    %31 = vector.extract_strided_slice %1 {offsets = [8, 0], sizes = [1, 512], strides = [1, 1]} : vector<9x512xf32> to vector<1x512xf32>
    %32 = vector.broadcast %31 : vector<1x512xf32> to vector<8x512xf32>
    %33 = arith.mulf %30, %32 : vector<8x512xf32>
    %34 = tpu.concatenate %5, %9, %13, %17, %0, %21, %25, %29, %33 in 0 : vector<8x512xf32>, vector<8x512xf32>, vector<8x512xf32>, vector<8x512xf32>, vector<8x512xf32>, vector<8x512xf32>, vector<8x512xf32>, vector<8x512xf32>, vector<8x512xf32> -> vector<72x512xf32>
    %c0_3 = arith.constant 0 : index
    %c0_4 = arith.constant 0 : index
    %35 = vector.load %arg3[%c0_3, %c0_4] : memref<8x72xf32, #tpu.memory_space<vmem>>, vector<8x72xf32>
    %cst = arith.constant dense<0.000000e+00> : vector<8x512xf32>
    %36 = tpu.matmul %35, %34, %cst {dimension_numbers = #tpu.dot_dimension_numbers<[1], [0], [0], [1], [0, 0, 1, 1], [], []>} : vector<8x72xf32>, vector<72x512xf32>, vector<8x512xf32> -> vector<8x512xf32>
    %c0_5 = arith.constant 0 : index
    %c0_6 = arith.constant 0 : index
    %37 = vector.load %arg4[%c0_5, %c0_6] : memref<8x1xf32, #tpu.memory_space<vmem>>, vector<8x1xf32>
    %38 = vector.broadcast %37 : vector<8x1xf32> to vector<8x512xf32>
    %39 = arith.addf %36, %38 : vector<8x512xf32>
    %cst_7 = arith.constant 0.000000e+00 : f32
    %40 = vector.broadcast %cst_7 : f32 to vector<8x512xf32>
    %41 = arith.maximumf %39, %40 : vector<8x512xf32>
    %c17_i32_8 = arith.constant 17 : i32
    %42 = tpu.dynamic_rotate %41 by %c17_i32_8 dim 1 : vector<8x512xf32>, i32 -> vector<8x512xf32>
    %43 = vector.extract_strided_slice %1 {offsets = [0, 0], sizes = [1, 512], strides = [1, 1]} : vector<9x512xf32> to vector<1x512xf32>
    %44 = vector.broadcast %43 : vector<1x512xf32> to vector<8x512xf32>
    %45 = arith.mulf %42, %44 : vector<8x512xf32>
    %c16_i32_9 = arith.constant 16 : i32
    %46 = tpu.dynamic_rotate %41 by %c16_i32_9 dim 1 : vector<8x512xf32>, i32 -> vector<8x512xf32>
    %47 = vector.extract_strided_slice %1 {offsets = [1, 0], sizes = [1, 512], strides = [1, 1]} : vector<9x512xf32> to vector<1x512xf32>
    %48 = vector.broadcast %47 : vector<1x512xf32> to vector<8x512xf32>
    %49 = arith.mulf %46, %48 : vector<8x512xf32>
    %c15_i32_10 = arith.constant 15 : i32
    %50 = tpu.dynamic_rotate %41 by %c15_i32_10 dim 1 : vector<8x512xf32>, i32 -> vector<8x512xf32>
    %51 = vector.extract_strided_slice %1 {offsets = [2, 0], sizes = [1, 512], strides = [1, 1]} : vector<9x512xf32> to vector<1x512xf32>
    %52 = vector.broadcast %51 : vector<1x512xf32> to vector<8x512xf32>
    %53 = arith.mulf %50, %52 : vector<8x512xf32>
    %c1_i32_11 = arith.constant 1 : i32
    %54 = tpu.dynamic_rotate %41 by %c1_i32_11 dim 1 : vector<8x512xf32>, i32 -> vector<8x512xf32>
    %55 = vector.extract_strided_slice %1 {offsets = [3, 0], sizes = [1, 512], strides = [1, 1]} : vector<9x512xf32> to vector<1x512xf32>
    %56 = vector.broadcast %55 : vector<1x512xf32> to vector<8x512xf32>
    %57 = arith.mulf %54, %56 : vector<8x512xf32>
    %c511_i32_12 = arith.constant 511 : i32
    %58 = tpu.dynamic_rotate %41 by %c511_i32_12 dim 1 : vector<8x512xf32>, i32 -> vector<8x512xf32>
    %59 = vector.extract_strided_slice %1 {offsets = [5, 0], sizes = [1, 512], strides = [1, 1]} : vector<9x512xf32> to vector<1x512xf32>
    %60 = vector.broadcast %59 : vector<1x512xf32> to vector<8x512xf32>
    %61 = arith.mulf %58, %60 : vector<8x512xf32>
    %c497_i32_13 = arith.constant 497 : i32
    %62 = tpu.dynamic_rotate %41 by %c497_i32_13 dim 1 : vector<8x512xf32>, i32 -> vector<8x512xf32>
    %63 = vector.extract_strided_slice %1 {offsets = [6, 0], sizes = [1, 512], strides = [1, 1]} : vector<9x512xf32> to vector<1x512xf32>
    %64 = vector.broadcast %63 : vector<1x512xf32> to vector<8x512xf32>
    %65 = arith.mulf %62, %64 : vector<8x512xf32>
    %c496_i32_14 = arith.constant 496 : i32
    %66 = tpu.dynamic_rotate %41 by %c496_i32_14 dim 1 : vector<8x512xf32>, i32 -> vector<8x512xf32>
    %67 = vector.extract_strided_slice %1 {offsets = [7, 0], sizes = [1, 512], strides = [1, 1]} : vector<9x512xf32> to vector<1x512xf32>
    %68 = vector.broadcast %67 : vector<1x512xf32> to vector<8x512xf32>
    %69 = arith.mulf %66, %68 : vector<8x512xf32>
    %c495_i32_15 = arith.constant 495 : i32
    %70 = tpu.dynamic_rotate %41 by %c495_i32_15 dim 1 : vector<8x512xf32>, i32 -> vector<8x512xf32>
    %71 = vector.extract_strided_slice %1 {offsets = [8, 0], sizes = [1, 512], strides = [1, 1]} : vector<9x512xf32> to vector<1x512xf32>
    %72 = vector.broadcast %71 : vector<1x512xf32> to vector<8x512xf32>
    %73 = arith.mulf %70, %72 : vector<8x512xf32>
    %74 = tpu.concatenate %45, %49, %53, %57, %41, %61, %65, %69, %73 in 0 : vector<8x512xf32>, vector<8x512xf32>, vector<8x512xf32>, vector<8x512xf32>, vector<8x512xf32>, vector<8x512xf32>, vector<8x512xf32>, vector<8x512xf32>, vector<8x512xf32> -> vector<72x512xf32>
    %c0_16 = arith.constant 0 : index
    %c0_17 = arith.constant 0 : index
    %75 = vector.load %arg5[%c0_16, %c0_17] : memref<8x72xf32, #tpu.memory_space<vmem>>, vector<8x72xf32>
    %cst_18 = arith.constant dense<0.000000e+00> : vector<8x512xf32>
    %76 = tpu.matmul %75, %74, %cst_18 {dimension_numbers = #tpu.dot_dimension_numbers<[1], [0], [0], [1], [0, 0, 1, 1], [], []>} : vector<8x72xf32>, vector<72x512xf32>, vector<8x512xf32> -> vector<8x512xf32>
    %c0_19 = arith.constant 0 : index
    %c0_20 = arith.constant 0 : index
    %77 = vector.load %arg6[%c0_19, %c0_20] : memref<8x1xf32, #tpu.memory_space<vmem>>, vector<8x1xf32>
    %78 = vector.broadcast %77 : vector<8x1xf32> to vector<8x512xf32>
    %79 = arith.addf %76, %78 : vector<8x512xf32>
    %80 = arith.addf %0, %79 : vector<8x512xf32>
    %c0_21 = arith.constant 0 : index
    %c0_22 = arith.constant 0 : index
    %81 = vector.load %arg7[%c0_21, %c0_22] : memref<8x512xf32, #tpu.memory_space<vmem>>, vector<8x512xf32>
    tpu.vector_store %arg7[%c0_21, %c0_22], %80 {strides = array<i32>} : memref<8x512xf32, #tpu.memory_space<vmem>>, vector<8x512xf32>,
    return
  }
  func.func @transform_0(%arg0: i32) -> (i32, i32) {
    %c0_i32 = arith.constant 0 : i32
    %c0_i32_0 = arith.constant 0 : i32
    return %c0_i32, %arg0 : i32, i32
  }
  func.func @transform_1(%arg0: i32) -> (i32, i32) {
    %c0_i32 = arith.constant 0 : i32
    %c0_i32_0 = arith.constant 0 : i32
    %c0_i32_1 = arith.constant 0 : i32
    return %c0_i32, %c0_i32_0 : i32, i32
  }
  func.func @transform_2(%arg0: i32) -> (i32, i32) {
    %c0_i32 = arith.constant 0 : i32
    %c0_i32_0 = arith.constant 0 : i32
    %c0_i32_1 = arith.constant 0 : i32
    return %c0_i32, %c0_i32_0 : i32, i32
  }
  func.func @transform_3(%arg0: i32) -> (i32, i32) {
    %c0_i32 = arith.constant 0 : i32
    %c0_i32_0 = arith.constant 0 : i32
    %c0_i32_1 = arith.constant 0 : i32
    return %c0_i32, %c0_i32_0 : i32, i32
  }
  func.func @transform_4(%arg0: i32) -> (i32, i32) {
    %c0_i32 = arith.constant 0 : i32
    %c0_i32_0 = arith.constant 0 : i32
    %c0_i32_1 = arith.constant 0 : i32
    return %c0_i32, %c0_i32_0 : i32, i32
  }
  func.func @transform_5(%arg0: i32) -> (i32, i32) {
    %c0_i32 = arith.constant 0 : i32
    %c0_i32_0 = arith.constant 0 : i32
    %c0_i32_1 = arith.constant 0 : i32
    return %c0_i32, %c0_i32_0 : i32, i32
  }
  func.func @transform_6(%arg0: i32) -> (i32, i32) {
    %c0_i32 = arith.constant 0 : i32
    %c0_i32_0 = arith.constant 0 : i32
    return %c0_i32, %arg0 : i32, i32
  }
}

</mosaic_0001>

<bundles_post_ra>
// kernel: tpu_custom_call.1
= control target key start
LH: loop header
LB: loop body
LE: loop exit
PB: predicated region body
PF: predicated region fallthrough
CT: control target
= control target key end

     0   :  { %11 = vsyncpa [#allocation3], 0  ;;  %s1529_s0 = inlined_call_operand.hbm [shape: f32[8,512], index: 0, kind: input, shape index: {}]   ;;  %s1530_s1 = inlined_call_operand.hbm [shape: f32[9,512], index: 1, kind: input, shape index: {}]   ;;  %s1531_s2 = inlined_call_operand.vmem [shape: f32[8,72], index: 2, kind: input, shape index: {}]   ;;  %s1532_s3 = inlined_call_operand.vmem [shape: f32[8,1], index: 3, kind: input, shape index: {}]   ;;  %s1533_s4 = inlined_call_operand.vmem [shape: f32[8,72], index: 4, kind: input, shape index: {}]   ;;  %s1534_s5 = inlined_call_operand.vmem [shape: f32[8,1], index: 5, kind: input, shape index: {}]   ;;  %s1535_s6 = inlined_call_operand.hbm [shape: f32[8,512], index: 6, kind: output, shape index: {}]  }
   0x1   :  { %12 = vsyncpa [#allocation6], 0 }
   0x2   :  { %13 = vsyncpa [#allocation4], 0  ;;  %s949_s21 = smov [#allocation2]   ;;  %s950_s23 = smov [#allocation5]  }
   0x3   :  { %s20_s22 = sshll.u32 %s949_s21, 4  ;;  %s29_s24 = sshll.u32 %s950_s23, 4  ;;  %s21_s22 = int_to_ptr.vmem [resolvable:$true] %s20_s22  ;;  %s999_s24 = int_to_ptr.vmem [resolvable:$true] %s29_s24 }
   0x4   :  { %s877_s27 = scalar_lea.hbm %s1529_s0, 512 }
   0x5   :  { %p878_p0 = scmp.ne.s32.totalorder %s1529_s0, %s877_s27  ;;  %p881_p1 = scmp.lt.u32.totalorder %s877_s27, %s1529_s0 }
   0x7   :  { %p883_p2 = pnand %p881_p1, %p878_p0 }
   0x9   :  { %886 = shalt.err (!%p883_p2)
}
   0xa   :  { %s887_s8 = scalar_lea.vmem %s21_s22, 512  ;;  %p892_p4 = scmp.lt.s32.totalorder %s21_s22, %s21_s22 }
   0xb   :  { %p888_p3 = scmp.ne.s32.totalorder %s21_s22, %s887_s8  ;;  %p893_p5 = scmp.lt.s32.totalorder %s887_s8, %s887_s8 }
   0xd   :  { %p894_p6 = por %p893_p5, %p892_p4 }
   0xf   :  { %p895_p7 = pnand %p894_p6, %p888_p3 }
  0x11   :  { %898 = shalt.err (!%p895_p7)
}
  0x12   :  { %23 = dma.hbm_to_vmem [thread:$0]  %s1529_s0, 512, %s21_s22, [#allocation3]  }
  0x13   :  { %s899_s13 = scalar_lea.hbm %s1530_s1, 1024 }
  0x14   :  { %p900_p8 = scmp.ne.s32.totalorder %s1530_s1, %s899_s13  ;;  %p903_p9 = scmp.lt.u32.totalorder %s899_s13, %s1530_s1 }
  0x16   :  { %p905_p10 = pnand %p903_p9, %p900_p8 }
  0x18   :  { %908 = shalt.err (!%p905_p10)
}
  0x19   :  { %s909_s18 = scalar_lea.vmem %s999_s24, 1024  ;;  %p914_p12 = scmp.lt.s32.totalorder %s999_s24, %s999_s24 }
  0x1a   :  { %p910_p11 = scmp.ne.s32.totalorder %s999_s24, %s909_s18  ;;  %p915_p13 = scmp.lt.s32.totalorder %s909_s18, %s909_s18 }
  0x1c   :  { %p916_p0 = por %p915_p13, %p914_p12 }
  0x1e   :  { %p917_p1 = pnand %p916_p0, %p910_p11 }
  0x20   :  { %920 = shalt.err (!%p917_p1)
}
  0x21   :  { %s951_s0 = smov 512   ;;  %s952_s19 = smov 32  }
  0x22   :  { %35 = dma.hbm_to_vmem [thread:$0]  %s1530_s1, 1024, %s999_s24, [#allocation6], %s951_s0, %s951_s0, %s952_s19  }
  0x23   :  { %943 = dma.done.wait [#allocation3], 512  }
  0x24   :  { %944 = vsyncadd [#allocation3], 4294966784 }
  0x25   :  { %945 = dma.done.wait [#allocation6], 1024  }
  0x26   :  { %946 = vsyncadd [#allocation6], 4294966272  ;;  %v1030_v0 = vld [vmem:[#allocation2 + $0x10] sm:$0xff]  ;;  %v1032_v1 = vld [vmem:[#allocation2] sm:$0xff]  ;;  %s953_s22 = smov 17   ;;  %s954_s1 = smov 16   ;;  %v70_v7 = vlaneseq }
  0x27   :  { %66 = vrot.lane.b32.xlu1 %v1030_v0, %s953_s22  ;;  %62 = vrot.lane.b32.xlu0 %v1032_v1, %s953_s22  ;;  %v1038_v2 = vld [vmem:[#allocation2 + $0x18] sm:$0xff]  ;;  %v1040_v3 = vld [vmem:[#allocation2 + $0x8] sm:$0xff]  ;;  %s955_s23 = smov 15   ;;  %s956_s24 = smov 1   ;;  %v960_v4 = vmov 0.0   ;;  %v961_v5 = vmov 0  }
  0x28   :  { %s957_s25 = smov 127   ;;  %s958_s26 = smov 113   ;;  %403 = vmatprep.mubr.f32.mxu0 %v960_v4  ;;  %474 = vmatprep.mubr.f32.mxu1 %v960_v4  ;;  %v329_v6 = vld [vmem:[%s1532_s3] sm:$0xff]  ;;  %v1107_v8 = vshrl.u32 %v70_v7, 7  ;;  %v1109_v11 = vand.u32 127, %v70_v7  ;;  %v1113_v14 = vld [vmem:[#allocation5 + $0x8] sm:$0xff] }
  0x29   :  { %s959_s27 = smov 112   ;;  %876 = vset.pattern.permute.xlu0 %v961_v5  ;;  %s962_s28 = smov 111   ;;  %v1116_v17 = vld [vmem:[#allocation5] sm:$0xff]  ;;  %v1118_v18 = vld [vmem:[#allocation5 + $0x10] sm:$0xff]  ;;  %v1127_v21 = vld [vmem:[#allocation5 + $0x18] sm:$0xff]  ;;  %vm335_vm8 = vcmask 588800  }
  0x2a   :  { %v79_v12 = vsub.s32 0, %v1107_v8  ;;  %v112_v13 = vsub.s32 1, %v1107_v8  ;;  %vm72_vm0 = vcmp.lt.s32.totalorder %v1109_v11, 17  ;;  %vm105_vm1 = vcmp.lt.s32.totalorder %v1109_v11, 16 }
  0x2b   :  { %68 = vrot.lane.b32.xlu1 %v1038_v2, %s953_s22  ;;  %64 = vrot.lane.b32.xlu0 %v1040_v3, %s953_s22  ;;  %v145_v54 = vsub.s32 2, %v1107_v8  ;;  %v178_v55 = vsub.s32 3, %v1107_v8  ;;  %vm138_vm2 = vcmp.lt.s32.totalorder %v1109_v11, 15  ;;  %vm171_vm3 = vcmp.lt.s32.totalorder %v1109_v11, 1 }
  0x2c   :  { %v1122_v19 = vrot.slane %v1113_v14, %v79_v12  ;;  %v1125_v20 = vrot.slane %v1113_v14, %v112_v13  ;;  %v1132_v23 = vrot.slane %v1116_v17, %v79_v12  ;;  %v1135_v24 = vrot.slane %v1118_v18, %v79_v12 }
  0x2d   :  { %v1138_v27 = vrot.slane %v1116_v17, %v112_v13  ;;  %v1145_v30 = vrot.slane %v1118_v18, %v112_v13  ;;  %v1148_v31 = vrot.slane %v1127_v21, %v79_v12  ;;  %v1155_v35 = vrot.slane %v1127_v21, %v112_v13 }
  0x2e   :  { %v1175_v58 = vrot.slane %v1113_v14, %v145_v54  ;;  %v1179_v59 = vrot.slane %v1113_v14, %v178_v55  ;;  %v1184_v61 = vrot.slane %v1116_v17, %v145_v54  ;;  %v1187_v62 = vrot.slane %v1118_v18, %v145_v54 }
  0x2f   :  { %99 = vrot.lane.b32.xlu1 %v1040_v3, %s954_s1  ;;  %97 = vrot.lane.b32.xlu0 %v1032_v1, %s954_s1  ;;  %v1190_v63 = vrot.slane %v1127_v21, %v145_v54  ;;  %v1200_v12 = vrot.slane %v1118_v18, %v178_v55  ;;  %vm204_vm4 = vcmp.lt.s32.totalorder %v1109_v11, 127  ;;  %vm270_vm5 = vcmp.lt.s32.totalorder %v1109_v11, 112 }
  0x30   :  { %vm237_vm6 = vcmp.lt.s32.totalorder %v1109_v11, 113  ;;  %vm303_vm7 = vcmp.lt.s32.totalorder %v1109_v11, 111 }
  0x33   :  { %103 = vrot.lane.b32.xlu1 %v1038_v2, %s954_s1  ;;  %101 = vrot.lane.b32.xlu0 %v1030_v0, %s954_s1 }
  0x37   :  { %132 = vrot.lane.b32.xlu1 %v1040_v3, %s955_s23  ;;  %130 = vrot.lane.b32.xlu0 %v1032_v1, %s955_s23 }
  0x3b   :  { %136 = vrot.lane.b32.xlu1 %v1038_v2, %s955_s23  ;;  %134 = vrot.lane.b32.xlu0 %v1030_v0, %s955_s23 }
  0x3f   :  { %165 = vrot.lane.b32.xlu1 %v1040_v3, %s956_s24  ;;  %163 = vrot.lane.b32.xlu0 %v1032_v1, %s956_s24 }
  0x43   :  { %169 = vrot.lane.b32.xlu1 %v1038_v2, %s956_s24  ;;  %167 = vrot.lane.b32.xlu0 %v1030_v0, %s956_s24 }
  0x47   :  { %198 = vrot.lane.b32.xlu1 %v1040_v3, %s957_s25  ;;  %196 = vrot.lane.b32.xlu0 %v1032_v1, %s957_s25 }
  0x4b   :  { %202 = vrot.lane.b32.xlu1 %v1038_v2, %s957_s25  ;;  %200 = vrot.lane.b32.xlu0 %v1030_v0, %s957_s25 }
  0x4f   :  { %231 = vrot.lane.b32.xlu1 %v1040_v3, %s958_s26  ;;  %229 = vrot.lane.b32.xlu0 %v1032_v1, %s958_s26 }
  0x53   :  { %235 = vrot.lane.b32.xlu1 %v1038_v2, %s958_s26  ;;  %233 = vrot.lane.b32.xlu0 %v1030_v0, %s958_s26 }
  0x57   :  { %264 = vrot.lane.b32.xlu1 %v1040_v3, %s959_s27  ;;  %262 = vrot.lane.b32.xlu0 %v1032_v1, %s959_s27 }
  0x5b   :  { %268 = vrot.lane.b32.xlu1 %v1038_v2, %s959_s27  ;;  %266 = vrot.lane.b32.xlu0 %v1030_v0, %s959_s27 }
  0x5f   :  { %297 = vrot.lane.b32.xlu1 %v1040_v3, %s962_s28  ;;  %295 = vrot.lane.b32.xlu0 %v1032_v1, %s962_s28 }
  0x63   :  { %301 = vrot.lane.b32.xlu1 %v1038_v2, %s962_s28  ;;  %299 = vrot.lane.b32.xlu0 %v1030_v0, %s962_s28 }
  0x67   :  { %332 = vperm.xlu0 %876, %v329_v6  }
  0x99   :  { %v67_v9 = vpop.permute.xlu1 %66  ;;  %v63_v10 = vpop.permute.xlu0 %62 }
  0x9d   :  { %v69_v15 = vpop.permute.xlu1 %68  ;;  %v65_v16 = vpop.permute.xlu0 %64 }
  0x9e   :  { %v75_v22 = vsel %vm72_vm0, %v63_v10, %v65_v16  ;;  %v76_v28 = vsel %vm72_vm0, %v69_v15, %v63_v10  ;;  %v74_v32 = vsel %vm72_vm0, %v65_v16, %v67_v9  ;;  %v73_v36 = vsel %vm72_vm0, %v67_v9, %v69_v15 }
  0x9f   :  { %v94_v33 = vmul.f32 %v1122_v19, %v75_v22  ;;  %v93_v37 = vmul.f32 %v1132_v23, %v76_v28  ;;  %v95_v41 = vmul.f32 %v1135_v24, %v74_v32  ;;  %v96_v47 = vmul.f32 %v1148_v31, %v73_v36 }
  0xa0   :  { %v1197_v10 = vrot.slane %v1116_v17, %v178_v55  ;;  %v1207_v22 = vrot.slane %v1127_v21, %v178_v55 }
  0xa1   :  { %v100_v25 = vpop.permute.xlu1 %99  ;;  %v98_v26 = vpop.permute.xlu0 %97 }
  0xa2   :  { %v108_v29 = vsel %vm105_vm1, %v98_v26, %v100_v25 }
  0xa3   :  { %v127_v34 = vmul.f32 %v1125_v20, %v108_v29 }
  0xa5   :  { %v104_v38 = vpop.permute.xlu1 %103  ;;  %v102_v39 = vpop.permute.xlu0 %101  ;;  %v797_v40 = vpack.c.bf16 %v127_v34, %v94_v33  ;;  %v211_v33 = vsub.s32 5, %v1107_v8 }
  0xa6   :  { %v109_v42 = vsel %vm105_vm1, %v104_v38, %v98_v26  ;;  %v106_v43 = vsel %vm105_vm1, %v102_v39, %v104_v38  ;;  %v107_v44 = vsel %vm105_vm1, %v100_v25, %v102_v39 }
  0xa7   :  { %v126_v45 = vmul.f32 %v1138_v27, %v109_v42  ;;  %v128_v46 = vmul.f32 %v1145_v30, %v107_v44  ;;  %798 = vmatprep.subr.bf16.mxu0 %v797_v40  ;;  %v129_v48 = vmul.f32 %v1155_v35, %v106_v43 }
  0xa9   :  { %v133_v49 = vpop.permute.xlu1 %132  ;;  %v131_v50 = vpop.permute.xlu0 %130  ;;  %v799_v51 = vpack.c.bf16 %v126_v45, %v93_v37  ;;  %v813_v52 = vpack.c.bf16 %v129_v48, %v96_v47  ;;  %v815_v53 = vpack.c.bf16 %v128_v46, %v95_v41  ;;  %v1226_v48 = vrot.slane %v1116_v17, %v211_v33 }
  0xaa   :  { %v141_v60 = vsel %vm138_vm2, %v131_v50, %v133_v49 }
  0xab   :  { %800 = vmatpush1.bf16.msra.mxu0 %v799_v51  ;;  %814 = vmatprep.subr.bf16.mxu1 %v813_v52  ;;  %v160_v13 = vmul.f32 %v1175_v58, %v141_v60  ;;  %v1234_v51 = vrot.slane %v1113_v14, %v211_v33  ;;  %v1237_v52 = vrot.slane %v1118_v18, %v211_v33 }
  0xac   :  { %816 = vmatpush1.bf16.msra.mxu1 %v815_v53 }
  0xad   :  { %v137_v56 = vpop.permute.xlu1 %136  ;;  %v135_v57 = vpop.permute.xlu0 %134 }
  0xae   :  { %v142_v7 = vsel %vm138_vm2, %v137_v56, %v131_v50  ;;  %v140_v15 = vsel %vm138_vm2, %v133_v49, %v135_v57  ;;  %v139_v25 = vsel %vm138_vm2, %v135_v57, %v137_v56  ;;  %v1229_v49 = vrot.slane %v1127_v21, %v211_v33 }
  0xaf   :  { %v159_v26 = vmul.f32 %v1184_v61, %v142_v7  ;;  %v161_v34 = vmul.f32 %v1187_v62, %v140_v15  ;;  %v162_v39 = vmul.f32 %v1190_v63, %v139_v25  ;;  %v244_v33 = vsub.s32 6, %v1107_v8 }
  0xb1   :  { %v166_v5 = vpop.permute.xlu1 %165  ;;  %v164_v6 = vpop.permute.xlu0 %163 }
  0xb2   :  { %v174_v9 = vsel %vm171_vm3, %v164_v6, %v166_v5 }
  0xb3   :  { %v193_v16 = vmul.f32 %v1179_v59, %v174_v9 }
  0xb5   :  { %v170_v28 = vpop.permute.xlu1 %169  ;;  %v168_v29 = vpop.permute.xlu0 %167  ;;  %v801_v32 = vpack.c.bf16 %v193_v16, %v160_v13 }
  0xb6   :  { %v175_v36 = vsel %vm171_vm3, %v170_v28, %v164_v6  ;;  %v172_v37 = vsel %vm171_vm3, %v168_v29, %v170_v28  ;;  %v173_v38 = vsel %vm171_vm3, %v166_v5, %v168_v29 }
  0xb7   :  { %v192_v40 = vmul.f32 %v1197_v10, %v175_v36  ;;  %v194_v41 = vmul.f32 %v1200_v12, %v173_v38  ;;  %v195_v42 = vmul.f32 %v1207_v22, %v172_v37  ;;  %802 = vmatprep.subr.bf16.mxu0 %v801_v32  ;;  %v277_v32 = vsub.s32 7, %v1107_v8 }
  0xb8   :  { %v1261_v36 = vrot.slane %v1113_v14, %v244_v33 }
  0xb9   :  { %v199_v43 = vpop.permute.xlu1 %198  ;;  %v197_v44 = vpop.permute.xlu0 %196  ;;  %v803_v45 = vpack.c.bf16 %v192_v40, %v159_v26  ;;  %v817_v46 = vpack.c.bf16 %v195_v42, %v162_v39  ;;  %v819_v47 = vpack.c.bf16 %v194_v41, %v161_v34  ;;  %v1258_v34 = vrot.slane %v1127_v21, %v244_v33 }
  0xba   :  { %v207_v50 = vsel %vm204_vm4, %v197_v44, %v199_v43  ;;  %v1266_v40 = vrot.slane %v1118_v18, %v244_v33  ;;  %v1271_v41 = vrot.slane %v1116_v17, %v277_v32 }
  0xbb   :  { %804 = vmatpush1.bf16.msra.mxu0 %v803_v45  ;;  %818 = vmatprep.subr.bf16.mxu1 %v817_v46  ;;  %v225_v55 = vmul.f32 %v1226_v48, %v207_v50  ;;  %v1282_v45 = vrot.slane %v1118_v18, %v277_v32  ;;  %v1285_v46 = vrot.slane %v1116_v17, %v244_v33  ;;  %v1312_v33 = vld [vmem:[#allocation5 + $0x20] ss:$0 sm:$0xff] }
  0xbc   :  { %820 = vmatpush1.bf16.msra.mxu1 %v819_v47 }
  0xbd   :  { %v203_v53 = vpop.permute.xlu1 %202  ;;  %v201_v54 = vpop.permute.xlu0 %200  ;;  %v807_v26 = vpack.c.bf16 %v225_v55, %v1032_v1 }
  0xbe   :  { %v208_v56 = vsel %vm204_vm4, %v203_v53, %v197_v44  ;;  %v205_v57 = vsel %vm204_vm4, %v201_v54, %v203_v53  ;;  %v206_v60 = vsel %vm204_vm4, %v199_v43, %v201_v54  ;;  %v1276_v43 = vrot.slane %v1127_v21, %v277_v32 }
  0xbf   :  { %v228_v5 = vmul.f32 %v1229_v49, %v208_v56  ;;  %v226_v6 = vmul.f32 %v1234_v51, %v206_v60  ;;  %v227_v7 = vmul.f32 %v1237_v52, %v205_v57  ;;  %v1279_v44 = vrot.slane %v1113_v14, %v277_v32  ;;  %v1310_v32 = vld [vmem:[#allocation5 + $0x30] ss:$0 sm:$0xff] }
  0xc1   :  { %v232_v9 = vpop.permute.xlu1 %231  ;;  %v230_v13 = vpop.permute.xlu0 %229  ;;  %v805_v15 = vpack.c.bf16 %v226_v6, %v1040_v3  ;;  %v821_v16 = vpack.c.bf16 %v228_v5, %v1038_v2  ;;  %v823_v25 = vpack.c.bf16 %v227_v7, %v1030_v0 }
  0xc2   :  { %v240_v50 = vsel %vm237_vm6, %v230_v13, %v232_v9 }
  0xc3   :  { %806 = vmatprep.subr.bf16.mxu0 %v805_v15  ;;  %822 = vmatprep.subr.bf16.mxu1 %v821_v16  ;;  %v258_v7 = vmul.f32 %v1285_v46, %v240_v50 }
  0xc4   :  { %808 = vmatpush1.bf16.msra.mxu0 %v807_v26  ;;  %824 = vmatpush1.bf16.msra.mxu1 %v823_v25 }
  0xc5   :  { %v236_v28 = vpop.permute.xlu1 %235  ;;  %v234_v29 = vpop.permute.xlu0 %233 }
  0xc6   :  { %v241_v39 = vsel %vm237_vm6, %v236_v28, %v230_v13  ;;  %v239_v8 = vsel %vm237_vm6, %v232_v9, %v234_v29  ;;  %v238_v47 = vsel %vm237_vm6, %v234_v29, %v236_v28  ;;  %v1306_v28 = vld [vmem:[#allocation5 + $0x38] ss:$0 sm:$0xff]  ;;  %v1308_v29 = vld [vmem:[#allocation5 + $0x28] ss:$0 sm:$0xff] }
  0xc7   :  { %v261_v53 = vmul.f32 %v1258_v34, %v241_v39  ;;  %v259_v21 = vmul.f32 %v1261_v36, %v239_v8  ;;  %v260_v57 = vmul.f32 %v1266_v40, %v238_v47 }
  0xc9   :  { %v265_v37 = vpop.permute.xlu1 %264  ;;  %v263_v38 = vpop.permute.xlu0 %262 }
  0xca   :  { %v273_v42 = vsel %vm270_vm5, %v263_v38, %v265_v37 }
  0xcb   :  { %v291_v14 = vmul.f32 %v1271_v41, %v273_v42 }
  0xcd   :  { %v269_v54 = vpop.permute.xlu1 %268  ;;  %v267_v55 = vpop.permute.xlu0 %266  ;;  %v811_v26 = vpack.c.bf16 %v291_v14, %v258_v7 }
  0xce   :  { %v274_v18 = vsel %vm270_vm5, %v269_v54, %v263_v38  ;;  %v271_v17 = vsel %vm270_vm5, %v267_v55, %v269_v54  ;;  %v272_v56 = vsel %vm270_vm5, %v265_v37, %v267_v55  ;;  %v328_v55 = vld [vmem:[%s1531_s2] sm:$0xff] }
  0xcf   :  { %v294_v60 = vmul.f32 %v1276_v43, %v274_v18  ;;  %v292_v5 = vmul.f32 %v1279_v44, %v272_v56  ;;  %v293_v6 = vmul.f32 %v1282_v45, %v271_v17 }
  0xd1   :  { %v298_v9 = vpop.permute.xlu1 %297  ;;  %v296_v13 = vpop.permute.xlu0 %295  ;;  %v809_v15 = vpack.c.bf16 %v292_v5, %v259_v21  ;;  %v825_v16 = vpack.c.bf16 %v294_v60, %v261_v53  ;;  %v827_v25 = vpack.c.bf16 %v293_v6, %v260_v57 }
  0xd2   :  { %v306_v37 = vsel %vm303_vm7, %v296_v13, %v298_v9 }
  0xd3   :  { %810 = vmatprep.subr.bf16.mxu0 %v809_v15  ;;  %826 = vmatprep.subr.bf16.mxu1 %v825_v16  ;;  %v324_v54 = vmul.f32 %v1312_v33, %v306_v37  ;;  %v614_v16 = vld [vmem:[%s1534_s5] sm:$0xff] }
  0xd4   :  { %812 = vmatpush1.bf16.msra.mxu0 %v811_v26  ;;  %828 = vmatpush1.bf16.msra.mxu1 %v827_v25 }
  0xd5   :  { %v302_v38 = vpop.permute.xlu1 %301  ;;  %v300_v39 = vpop.permute.xlu0 %299 }
  0xd6   :  { %v307_v8 = vsel %vm303_vm7, %v302_v38, %v296_v13  ;;  %v304_v42 = vsel %vm303_vm7, %v300_v39, %v302_v38  ;;  %v305_v47 = vsel %vm303_vm7, %v298_v9, %v300_v39 }
  0xd7   :  { %v327_v50 = vmul.f32 %v1306_v28, %v307_v8  ;;  %v325_v53 = vmul.f32 %v1308_v29, %v305_v47  ;;  %v326_v21 = vmul.f32 %v1310_v32, %v304_v42 }
  0xd9   :  { %355 = vmatprep.subr.mxu0 %v325_v53  ;;  %426 = vmatprep.subr.mxu1 %v327_v50 }
  0xda   :  { %356 = vmatpush1.msra.mxu0 %v324_v54  ;;  %427 = vmatpush1.msra.mxu1 %v326_v21 }
  0xdb   :  { %793 = vmatmul.mubr.msk.f32.vlgmr.msra.gmra.mrb[0].mxu0 %vm335_vm8, %v328_v55  ;;  %794 = vmatmul.mubr.msk.f32.vlgmr.msra.gmra.mrb[0].mxu1 %vm335_vm8, %v328_v55 }
  0xdc   :  { %687 = vmatprep.mubr.f32.mxu0 %v960_v4  ;;  %758 = vmatprep.mubr.f32.mxu1 %v960_v4 }
  0xe6   :  { %v333_v14 = vpop.permute.xlu0 %332 }
 0x1ae   :  { %v405_v18 = vpop.f32.mrb[0].mxu0  ;;  %v476_v17 = vpop.f32.mrb[0].mxu1 }
 0x1af   :  { %v406_v56 = vadd.f32 %v405_v18, %v333_v14  ;;  %v477_v57 = vadd.f32 %v476_v17, %v333_v14  ;;  %v407_v60 = vpop.f32.mrb[1].mxu0  ;;  %v478_v5 = vpop.f32.mrb[1].mxu1 }
 0x1b0   :  { %v408_v9 = vadd.f32 %v407_v60, %v333_v14  ;;  %v479_v4 = vadd.f32 %v478_v5, %v333_v14 }
 0x1b1   :  { %v1333_v6 = vmax.f32 %v406_v56, 0.0  ;;  %v1335_v7 = vmax.f32 %v477_v57, 0.0 }
 0x1b2   :  { %v1341_v13 = vmax.f32 %v408_v9, 0.0  ;;  %v1347_v15 = vmax.f32 %v479_v4, 0.0 }
 0x1b3   :  { %489 = vrot.lane.b32.xlu0 %v1335_v7, %s953_s22  ;;  %485 = vrot.lane.b32.xlu1 %v1333_v6, %s953_s22 }
 0x1b7   :  { %501 = vrot.lane.b32.xlu0 %v1333_v6, %s954_s1  ;;  %487 = vrot.lane.b32.xlu1 %v1341_v13, %s953_s22 }
 0x1bb   :  { %505 = vrot.lane.b32.xlu0 %v1335_v7, %s954_s1  ;;  %491 = vrot.lane.b32.xlu1 %v1347_v15, %s953_s22 }
 0x1bf   :  { %517 = vrot.lane.b32.xlu0 %v1333_v6, %s955_s23  ;;  %503 = vrot.lane.b32.xlu1 %v1341_v13, %s954_s1 }
 0x1c3   :  { %521 = vrot.lane.b32.xlu0 %v1335_v7, %s955_s23  ;;  %507 = vrot.lane.b32.xlu1 %v1347_v15, %s954_s1 }
 0x1c7   :  { %533 = vrot.lane.b32.xlu0 %v1333_v6, %s956_s24  ;;  %519 = vrot.lane.b32.xlu1 %v1341_v13, %s955_s23 }
 0x1cb   :  { %537 = vrot.lane.b32.xlu0 %v1335_v7, %s956_s24  ;;  %523 = vrot.lane.b32.xlu1 %v1347_v15, %s955_s23 }
 0x1cf   :  { %549 = vrot.lane.b32.xlu0 %v1333_v6, %s957_s25  ;;  %535 = vrot.lane.b32.xlu1 %v1341_v13, %s956_s24 }
 0x1d3   :  { %553 = vrot.lane.b32.xlu0 %v1335_v7, %s957_s25  ;;  %539 = vrot.lane.b32.xlu1 %v1347_v15, %s956_s24 }
 0x1d7   :  { %565 = vrot.lane.b32.xlu0 %v1333_v6, %s958_s26  ;;  %551 = vrot.lane.b32.xlu1 %v1341_v13, %s957_s25 }
 0x1db   :  { %569 = vrot.lane.b32.xlu0 %v1335_v7, %s958_s26  ;;  %555 = vrot.lane.b32.xlu1 %v1347_v15, %s957_s25 }
 0x1df   :  { %581 = vrot.lane.b32.xlu0 %v1333_v6, %s959_s27  ;;  %567 = vrot.lane.b32.xlu1 %v1341_v13, %s958_s26 }
 0x1e3   :  { %585 = vrot.lane.b32.xlu0 %v1335_v7, %s959_s27  ;;  %571 = vrot.lane.b32.xlu1 %v1347_v15, %s958_s26 }
 0x1e7   :  { %597 = vrot.lane.b32.xlu0 %v1333_v6, %s962_s28  ;;  %583 = vrot.lane.b32.xlu1 %v1341_v13, %s959_s27 }
 0x1eb   :  { %601 = vrot.lane.b32.xlu0 %v1335_v7, %s962_s28  ;;  %587 = vrot.lane.b32.xlu1 %v1347_v15, %s959_s27 }
 0x1ef   :  { %617 = vperm.xlu0 %876, %v614_v16   ;;  %599 = vrot.lane.b32.xlu1 %v1341_v13, %s962_s28 }
 0x1f3   :  { %603 = vrot.lane.b32.xlu1 %v1347_v15, %s962_s28 }
 0x225   :  { %v490_v25 = vpop.permute.xlu0 %489  ;;  %v486_v26 = vpop.permute.xlu1 %485 }
 0x229   :  { %v502_v37 = vpop.permute.xlu0 %501  ;;  %v488_v38 = vpop.permute.xlu1 %487 }
 0x22a   :  { %v495_v42 = vsel %vm72_vm0, %v486_v26, %v488_v38  ;;  %v494_v17 = vsel %vm72_vm0, %v488_v38, %v490_v25 }
 0x22b   :  { %v498_v21 = vmul.f32 %v495_v42, %v1122_v19 }
 0x22d   :  { %v506_v39 = vpop.permute.xlu0 %505  ;;  %v492_v8 = vpop.permute.xlu1 %491 }
 0x22e   :  { %v493_v14 = vsel %vm72_vm0, %v490_v25, %v492_v8  ;;  %v496_v18 = vsel %vm72_vm0, %v492_v8, %v486_v26  ;;  %v499_v25 = vmul.f32 %v494_v17, %v1135_v24 }
 0x22f   :  { %v497_v9 = vmul.f32 %v496_v18, %v1132_v23  ;;  %v500_v4 = vmul.f32 %v493_v14, %v1148_v31 }
 0x231   :  { %v518_v47 = vpop.permute.xlu0 %517  ;;  %v504_v50 = vpop.permute.xlu1 %503 }
 0x232   :  { %v511_v53 = vsel %vm105_vm1, %v502_v37, %v504_v50  ;;  %v510_v54 = vsel %vm105_vm1, %v504_v50, %v506_v39 }
 0x233   :  { %v514_v55 = vmul.f32 %v511_v53, %v1125_v20  ;;  %v515_v5 = vmul.f32 %v510_v54, %v1145_v30 }
 0x235   :  { %v522_v56 = vpop.permute.xlu0 %521  ;;  %v508_v57 = vpop.permute.xlu1 %507  ;;  %v829_v60 = vpack.c.bf16 %v514_v55, %v498_v21  ;;  %v847_v50 = vpack.c.bf16 %v515_v5, %v499_v25 }
 0x236   :  { %v509_v19 = vsel %vm105_vm1, %v506_v39, %v508_v57  ;;  %v512_v20 = vsel %vm105_vm1, %v508_v57, %v502_v37 }
 0x237   :  { %v513_v16 = vmul.f32 %v512_v20, %v1138_v27  ;;  %v516_v26 = vmul.f32 %v509_v19, %v1155_v35  ;;  %830 = vmatprep.subr.bf16.mxu0 %v829_v60 }
 0x239   :  { %v831_v38 = vpack.c.bf16 %v513_v16, %v497_v9  ;;  %v534_v8 = vpop.permute.xlu0 %533  ;;  %v520_v30 = vpop.permute.xlu1 %519  ;;  %v845_v42 = vpack.c.bf16 %v516_v26, %v500_v4 }
 0x23a   :  { %v527_v23 = vsel %vm138_vm2, %v518_v47, %v520_v30  ;;  %v526_v14 = vsel %vm138_vm2, %v520_v30, %v522_v56 }
 0x23b   :  { %832 = vmatpush1.bf16.msra.mxu0 %v831_v38  ;;  %846 = vmatprep.subr.bf16.mxu1 %v845_v42  ;;  %v530_v24 = vmul.f32 %v527_v23, %v1175_v58 }
 0x23c   :  { %848 = vmatpush1.bf16.msra.mxu1 %v847_v50 }
 0x23d   :  { %v538_v37 = vpop.permute.xlu0 %537  ;;  %v524_v39 = vpop.permute.xlu1 %523 }
 0x23e   :  { %v525_v54 = vsel %vm138_vm2, %v522_v56, %v524_v39  ;;  %v528_v55 = vsel %vm138_vm2, %v524_v39, %v518_v47  ;;  %v531_v56 = vmul.f32 %v526_v14, %v1187_v62 }
 0x23f   :  { %v529_v5 = vmul.f32 %v528_v55, %v1184_v61  ;;  %v532_v19 = vmul.f32 %v525_v54, %v1190_v63 }
 0x241   :  { %v550_v31 = vpop.permute.xlu0 %549  ;;  %v536_v27 = vpop.permute.xlu1 %535 }
 0x242   :  { %v543_v35 = vsel %vm171_vm3, %v534_v8, %v536_v27  ;;  %v542_v53 = vsel %vm171_vm3, %v536_v27, %v538_v37 }
 0x243   :  { %v546_v21 = vmul.f32 %v543_v35, %v1179_v59  ;;  %v547_v60 = vmul.f32 %v542_v53, %v1200_v12 }
 0x245   :  { %v554_v18 = vpop.permute.xlu0 %553  ;;  %v540_v17 = vpop.permute.xlu1 %539  ;;  %v833_v57 = vpack.c.bf16 %v546_v21, %v530_v24  ;;  %v851_v26 = vpack.c.bf16 %v547_v60, %v531_v56 }
 0x246   :  { %v541_v58 = vsel %vm171_vm3, %v538_v37, %v540_v17  ;;  %v544_v59 = vsel %vm171_vm3, %v540_v17, %v534_v8 }
 0x247   :  { %v545_v47 = vmul.f32 %v544_v59, %v1197_v10  ;;  %v548_v20 = vmul.f32 %v541_v58, %v1207_v22  ;;  %834 = vmatprep.subr.bf16.mxu0 %v833_v57 }
 0x249   :  { %v835_v9 = vpack.c.bf16 %v545_v47, %v529_v5  ;;  %v566_v4 = vpop.permute.xlu0 %565  ;;  %v552_v12 = vpop.permute.xlu1 %551  ;;  %v849_v16 = vpack.c.bf16 %v548_v20, %v532_v19 }
 0x24a   :  { %v558_v25 = vsel %vm204_vm4, %v552_v12, %v554_v18  ;;  %v559_v61 = vsel %vm204_vm4, %v550_v31, %v552_v12 }
 0x24b   :  { %v561_v63 = vmul.f32 %v559_v61, %v1226_v48  ;;  %v562_v10 = vmul.f32 %v558_v25, %v1234_v51  ;;  %836 = vmatpush1.bf16.msra.mxu0 %v835_v9  ;;  %850 = vmatprep.subr.bf16.mxu1 %v849_v16 }
 0x24c   :  { %852 = vmatpush1.bf16.msra.mxu1 %v851_v26 }
 0x24d   :  { %v839_v62 = vpack.c.bf16 %v561_v63, %v1333_v6  ;;  %v570_v22 = vpop.permute.xlu0 %569  ;;  %v556_v38 = vpop.permute.xlu1 %555  ;;  %v837_v8 = vpack.c.bf16 %v562_v10, %v1341_v13 }
 0x24e   :  { %v557_v30 = vsel %vm204_vm4, %v554_v18, %v556_v38  ;;  %v560_v42 = vsel %vm204_vm4, %v556_v38, %v550_v31 }
 0x24f   :  { %v563_v50 = vmul.f32 %v557_v30, %v1237_v52  ;;  %v564_v48 = vmul.f32 %v560_v42, %v1229_v49  ;;  %838 = vmatprep.subr.bf16.mxu0 %v837_v8 }
 0x250   :  { %840 = vmatpush1.bf16.msra.mxu0 %v839_v62 }
 0x251   :  { %v855_v51 = vpack.c.bf16 %v563_v50, %v1335_v7  ;;  %v582_v37 = vpop.permute.xlu0 %581  ;;  %v568_v6 = vpop.permute.xlu1 %567  ;;  %v853_v39 = vpack.c.bf16 %v564_v48, %v1347_v15 }
 0x252   :  { %v574_v27 = vsel %vm237_vm6, %v568_v6, %v570_v22  ;;  %v575_v52 = vsel %vm237_vm6, %v566_v4, %v568_v6 }
 0x253   :  { %854 = vmatprep.subr.bf16.mxu1 %v853_v39  ;;  %v577_v35 = vmul.f32 %v575_v52, %v1285_v46  ;;  %v578_v15 = vmul.f32 %v574_v27, %v1261_v36 }
 0x254   :  { %856 = vmatpush1.bf16.msra.mxu1 %v855_v51 }
 0x255   :  { %v586_v13 = vpop.permute.xlu0 %585  ;;  %v572_v23 = vpop.permute.xlu1 %571 }
 0x256   :  { %v573_v54 = vsel %vm237_vm6, %v570_v22, %v572_v23  ;;  %v576_v55 = vsel %vm237_vm6, %v572_v23, %v566_v4 }
 0x257   :  { %v579_v46 = vmul.f32 %v573_v54, %v1266_v40 }
 0x259   :  { %v584_v31 = vpop.permute.xlu1 %583  ;;  %v598_v24 = vpop.permute.xlu0 %597 }
 0x25a   :  { %v590_v49 = vsel %vm270_vm5, %v584_v31, %v586_v13  ;;  %v591_v7 = vsel %vm270_vm5, %v582_v37, %v584_v31 }
 0x25b   :  { %v593_v53 = vmul.f32 %v591_v7, %v1271_v41  ;;  %v594_v21 = vmul.f32 %v590_v49, %v1279_v44  ;;  %v580_v41 = vmul.f32 %v576_v55, %v1258_v34 }
 0x25d   :  { %v843_v14 = vpack.c.bf16 %v593_v53, %v577_v35  ;;  %v588_v18 = vpop.permute.xlu1 %587  ;;  %v841_v17 = vpack.c.bf16 %v594_v21, %v578_v15  ;;  %v602_v58 = vpop.permute.xlu0 %601 }
 0x25e   :  { %v589_v57 = vsel %vm270_vm5, %v586_v13, %v588_v18  ;;  %v592_v36 = vsel %vm270_vm5, %v588_v18, %v582_v37 }
 0x25f   :  { %v595_v44 = vmul.f32 %v589_v57, %v1282_v45  ;;  %v596_v60 = vmul.f32 %v592_v36, %v1276_v43  ;;  %842 = vmatprep.subr.bf16.mxu0 %v841_v17  ;;  %v613_v43 = vld [vmem:[%s1533_s4] sm:$0xff]  ;;  %s963_s4 = smov [#allocation7]  }
 0x260   :  { %844 = vmatpush1.bf16.msra.mxu0 %v843_v14  ;;  %s779_s10 = sshll.u32 %s963_s4, 4  ;;  %s780_s10 = int_to_ptr.vmem [resolvable:$true] %s779_s10 }
 0x261   :  { %v859_v59 = vpack.c.bf16 %v595_v44, %v579_v46  ;;  %v600_v5 = vpop.permute.xlu1 %599  ;;  %v857_v19 = vpack.c.bf16 %v596_v60, %v580_v41  ;;  %s921_s11 = scalar_lea.vmem %s780_s10, 512  ;;  %p926_p3 = scmp.lt.s32.totalorder %s780_s10, %s780_s10 }
 0x262   :  { %v606_v47 = vsel %vm303_vm7, %v600_v5, %v602_v58  ;;  %v607_v20 = vsel %vm303_vm7, %v598_v24, %v600_v5  ;;  %p922_p2 = scmp.ne.s32.totalorder %s780_s10, %s921_s11  ;;  %p927_p4 = scmp.lt.s32.totalorder %s921_s11, %s921_s11 }
 0x263   :  { %v609_v40 = vmul.f32 %v1312_v33, %v607_v20  ;;  %v610_v34 = vmul.f32 %v1308_v29, %v606_v47  ;;  %858 = vmatprep.subr.bf16.mxu1 %v857_v19 }
 0x264   :  { %860 = vmatpush1.bf16.msra.mxu1 %v859_v59  ;;  %p928_p5 = por %p927_p4, %p926_p3 }
 0x265   :  { %639 = vmatprep.subr.mxu0 %v610_v34  ;;  %v604_v45 = vpop.permute.xlu1 %603 }
 0x266   :  { %v605_v56 = vsel %vm303_vm7, %v602_v58, %v604_v45  ;;  %v608_v9 = vsel %vm303_vm7, %v604_v45, %v598_v24  ;;  %640 = vmatpush1.msra.mxu0 %v609_v40  ;;  %p929_p6 = pnand %p928_p5, %p922_p2 }
 0x267   :  { %v611_v4 = vmul.f32 %v1310_v32, %v605_v56  ;;  %v612_v33 = vmul.f32 %v1306_v28, %v608_v9  ;;  %795 = vmatmul.mubr.msk.f32.vlgmr.msra.gmra.mrb[2].mxu0 %vm335_vm8, %v613_v43 }
 0x269   :  { %710 = vmatprep.subr.mxu1 %v612_v33 }
 0x26a   :  { %711 = vmatpush1.msra.mxu1 %v611_v4 }
 0x26b   :  { %796 = vmatmul.mubr.msk.f32.vlgmr.msra.gmra.mrb[2].mxu1 %vm335_vm8, %v613_v43 }
 0x26e   :  { %v618_v29 = vpop.permute.xlu0 %617 }
 0x33a   :  { %v689_v12 = vpop.f32.mrb[2].mxu0 }
 0x33b   :  { %v690_v16 = vadd.f32 %v689_v12, %v618_v29  ;;  %v691_v26 = vpop.f32.mrb[3].mxu0 }
 0x33c   :  { %v692_v25 = vadd.f32 %v691_v26, %v618_v29 }
 0x33d   :  { %v765_v61 = vadd.f32 %v690_v16, %v1032_v1 }
 0x33e   :  { %v766_v11 = vadd.f32 %v692_v25, %v1040_v3  ;;  %v760_v63 = vpop.f32.mrb[2].mxu1 }
 0x33f   :  { %769 = vst [vmem:[#allocation7] sm:$0xff] %v765_v61  ;;  %v761_v32 = vadd.f32 %v760_v63, %v618_v29  ;;  %v762_v10 = vpop.f32.mrb[3].mxu1 }
 0x340   :  { %770 = vst [vmem:[#allocation7 + $0x8] sm:$0xff] %v766_v11  ;;  %v763_v28 = vadd.f32 %v762_v10, %v618_v29 }
 0x341   :  { %v767_v62 = vadd.f32 %v761_v32, %v1030_v0 }
 0x342   :  { %v768_v22 = vadd.f32 %v763_v28, %v1038_v2 }
 0x343   :  { %771 = vst [vmem:[#allocation7 + $0x10] sm:$0xff] %v767_v62 }
 0x344   :  { %772 = vst [vmem:[#allocation7 + $0x18] sm:$0xff] %v768_v22 }
 0x345   :  { %932 = shalt.err (!%p929_p6)
}
 0x346   :  { %s933_s14 = scalar_lea.hbm %s1535_s6, 512 }
 0x347   :  { %p934_p7 = scmp.ne.s32.totalorder %s1535_s6, %s933_s14  ;;  %p937_p8 = scmp.lt.u32.totalorder %s933_s14, %s1535_s6 }
 0x349   :  { %p939_p9 = pnand %p937_p8, %p934_p7 }
 0x34b   :  { %942 = shalt.err (!%p939_p9)
}
 0x34c   :  { %782 = dma.vmem_to_hbm [thread:$0]  %s780_s10, 512, %s1535_s6, [#allocation4]  }
 0x34d   :  { %947 = dma.done.wait [#allocation4], 512  }
 0x34e   :  { %948 = vsyncadd [#allocation4], 4294966784 }
 0x34f   :  { %786 = vsyncpa [#allocation3], 1 }
 0x350   :  { %787 = vsyncpa [#allocation6], 1 }
 0x351   :  { %788 = vsyncpa [#allocation4], 1 }

</bundles_post_ra>
